<compile_context>
chip_gen: v6e
topology: v6e:2x2x1
jax: 0.10.0
libtpu: 0.0.40
codegen_flags: <defaults>
</compile_context>

<pallas_src>
import functools

import jax
import jax.numpy as jnp
from jax.experimental import pallas as pl
from jax.experimental.pallas import tpu as pltpu


def _round_up(x, m):
    return ((x + m - 1) // m) * m


def _cdiv(a, b):
    return -(-a // b)


def _rince_kernel(pos_ref, neg_ref, loss_ref, acc_ref, *,
                  q, lam, tn, n_total, exp_dtype):
    # pos_ref : (TB, 1)   input dtype  -> upcast to f32 at finalize
    # neg_ref : (TB, TN)  input dtype  -> per-chunk upcast/exp (never stored)
    # loss_ref: (TB, 1)   f32 per-row loss (resident across the N axis)
    # acc_ref : (TB, 128) f32 lane-dense partial row-sum accumulator
    k = pl.program_id(1)
    nk = pl.num_programs(1)
    tb = acc_ref.shape[0]
    n_chunks = tn // 128

    @pl.when(k == 0)
    def _():
        acc_ref[...] = jnp.zeros_like(acc_ref)

    # Static ragged-tail analysis: only chunks that overlap the ragged column
    # tail of the *last* N tile can ever see garbage lanes.  For all other
    # chunks (and for all earlier grid steps) no mask is emitted at all.
    nk_static = _cdiv(n_total, tn)
    valid_last = n_total - (nk_static - 1) * tn      # valid cols in last tile
    any_mask = valid_last < tn

    if any_mask:
        lane = jax.lax.broadcasted_iota(jnp.int32, (tb, 128), 1)
        col_base = k * tn                            # dynamic scalar

    def exp_chunk(c):
        # Fused: slice ref -> upcast -> exp -> (mask) ; no 2-D intermediate.
        x = neg_ref[:, c * 128:(c + 1) * 128].astype(exp_dtype)
        e = jnp.exp(x).astype(jnp.float32)
        if any_mask and (c + 1) * 128 > valid_last:
            col = col_base + (c * 128) + lane
            e = jnp.where(col < n_total, e, 0.0)     # dynamic mask: no-op on
        return e                                     # earlier (full) tiles

    # Two interleaved partial-sum chains (pairwise), combined once.
    s0 = exp_chunk(0)
    s1 = exp_chunk(1) if n_chunks > 1 else None
    for c in range(2, n_chunks):
        if c % 2 == 0:
            s0 = s0 + exp_chunk(c)
        else:
            s1 = s1 + exp_chunk(c)
    acc_ref[...] += s0 if s1 is None else (s0 + s1)

    @pl.when(k == nk - 1)
    def _():
        neg_sum = jnp.sum(acc_ref[...], axis=1, keepdims=True)   # one XLU reduce
        exp_pos = jnp.exp(pos_ref[...].astype(jnp.float32))      # (TB, 1)
        exp_sum = exp_pos + neg_sum

        if q == 0.5:                                  # static Python branch
            pow_q = jnp.sqrt                          # 1 op instead of exp+log
        else:
            pow_q = lambda x: jnp.power(x, q)
        lam_q = lam ** q                              # compile-time constant

        loss_ref[...] = (lam_q * pow_q(exp_sum) - pow_q(exp_pos)) * (1.0 / q)


def rince_loss(pos, neg, q=0.5, lam=0.025, tb=None, tn=None, bf16_exp=False):
    """pos: (B, 1), neg: (B, N) (f32 or bf16) -> scalar f32 RINCE loss."""
    B = pos.shape[0]
    N = neg.shape[1]
    assert pos.shape == (B, 1) and neg.shape == (B, N)

    # N tile: multiple of 128; 4096 default keeps double-buffered f32 input at
    # 8 MiB for TB=256 (fits v5e's 16 MiB scoped default; amortizes per-step
    # overhead on v6e/v7x).
    if tn is None:
        tn = min(4096, _round_up(N, 128))
    tn = max(128, _round_up(tn, 128))

    # B tile: multiple of 8; shrink so the "parallel" B axis has >= 2 tiles
    # whenever possible (v7x megacore), capped at 256.
    if tb is None:
        tb = min(256, _round_up(B, 8))
        if B > 8 and _round_up(B, tb) // tb < 2:
            tb = _round_up(_cdiv(B, 2), 8)
    tb = max(8, _round_up(tb, 8))

    B_pad = _round_up(B, tb)          # output-only padding (no input jnp.pad)
    grid = (B_pad // tb, _cdiv(N, tn))

    # bf16 exp only when the input is bf16 and explicitly requested
    # (v6e/v7x bf16-capable EUP; keep f32 on v5e).
    exp_dtype = jnp.bfloat16 if (bf16_exp and neg.dtype == jnp.bfloat16) \
        else jnp.float32

    kernel = functools.partial(
        _rince_kernel, q=float(q), lam=float(lam), tn=tn, n_total=N,
        exp_dtype=exp_dtype)

    cost = pl.CostEstimate(
        flops=int(2 * B * N),
        transcendentals=int(B * N + 4 * B),
        bytes_accessed=int(pos.size * pos.dtype.itemsize
                           + neg.size * neg.dtype.itemsize
                           + B_pad * 4),
    )

    per_row = pl.pallas_call(
        kernel,
        out_shape=jax.ShapeDtypeStruct((B_pad, 1), jnp.float32),
        grid_spec=pltpu.PrefetchScalarGridSpec(
            num_scalar_prefetch=0,
            grid=grid,
            in_specs=[
                pl.BlockSpec((tb, 1), lambda i, k: (i, 0)),
                pl.BlockSpec((tb, tn), lambda i, k: (i, k)),
            ],
            out_specs=pl.BlockSpec((tb, 1), lambda i, k: (i, 0)),
            scratch_shapes=[pltpu.VMEM((tb, 128), jnp.float32)],
        ),
        compiler_params=pltpu.CompilerParams(
            dimension_semantics=("parallel", "arbitrary")),
        cost_estimate=cost,
    )(pos, neg)

    # Batch mean over the B real rows (ragged/garbage B-tail rows dropped).
    return jnp.mean(per_row[:B, 0])


def rince_reference(pos, neg, q=0.5, lam=0.025):
    pos = pos.astype(jnp.float32)
    neg = neg.astype(jnp.float32)
    exp_pos = jnp.exp(pos)[:, 0]
    exp_sum = exp_pos + jnp.exp(neg).sum(axis=1)
    loss = (-(exp_pos ** q) + (lam * exp_sum) ** q) / q
    return loss.mean()


if __name__ == "__main__":
    key = jax.random.PRNGKey(0)
    k1, k2 = jax.random.split(key)

    # 1) Aligned f32, forced small tiles -> grid (2, 4): exercises multi-step
    #    N accumulation, acc init/finalize, and a 2-wide parallel B axis.
    B, N = 16, 512
    pos = jax.random.normal(k1, (B, 1), dtype=jnp.float32)
    neg = jax.random.normal(k2, (B, N), dtype=jnp.float32)
    out = jax.block_until_ready(rince_loss(pos, neg, q=0.5, lam=0.025,
                                           tb=8, tn=128))
    ref = rince_reference(pos, neg, q=0.5, lam=0.025)
    assert jnp.allclose(out, ref, rtol=1e-5, atol=1e-5), (out, ref)

    # Same inputs through the default (auto-tile) config.
    out_d = jax.block_until_ready(rince_loss(pos, neg, q=0.5, lam=0.025))
    assert jnp.allclose(out_d, ref, rtol=1e-5, atol=1e-5), (out_d, ref)

    # 2) Unaligned B and N + bf16 negatives: in-kernel ragged-tail masking
    #    (no jnp.pad of neg), B-tail rows dropped, in-kernel upcast before exp.
    B2, N2 = 5, 200
    pos2 = jax.random.normal(k1, (B2, 1), dtype=jnp.float32)
    neg2 = jax.random.normal(k2, (B2, N2), dtype=jnp.bfloat16)
    out2 = jax.block_until_ready(rince_loss(pos2, neg2, q=0.5, lam=0.025))
    ref2 = rince_reference(pos2, neg2, q=0.5, lam=0.025)
    assert jnp.allclose(out2, ref2, rtol=1e-4, atol=1e-4), (out2, ref2)

    # 3) Non-sqrt q path + ragged N with a mix of masked/unmasked chunks.
    B3, N3 = 12, 300
    pos3 = jax.random.normal(k1, (B3, 1), dtype=jnp.float32)
    neg3 = jax.random.normal(k2, (B3, N3), dtype=jnp.float32)
    out3 = jax.block_until_ready(rince_loss(pos3, neg3, q=1.0, lam=0.05))
    ref3 = rince_reference(pos3, neg3, q=1.0, lam=0.05)
    assert jnp.allclose(out3, ref3, rtol=1e-5, atol=1e-5), (out3, ref3)

    # 4) Optional bf16-exp fast path, only on bf16-EUP-capable chips (v6e/v7x).
    dk = jax.devices()[0].device_kind.lower()
    if ("v6" in dk) or ("v7" in dk) or ("7x" in dk):
        out2b = jax.block_until_ready(
            rince_loss(pos2, neg2, q=0.5, lam=0.025, bf16_exp=True))
        assert jnp.allclose(out2b, ref2, rtol=2e-2, atol=2e-2), (out2b, ref2)

    print("KERNEL_OK")
</pallas_src>

<mosaic_0001>
module attributes {stable_mosaic.version = 11 : i64} {
  func.func @_rince_kernel(%arg0: i32, %arg1: i32, %arg2: memref<8x1xf32, #tpu.memory_space<vmem>>, %arg3: memref<8x128xf32, #tpu.memory_space<vmem>>, %arg4: memref<8x1xf32, #tpu.memory_space<vmem>>, %arg5: memref<8x128xf32, #tpu.memory_space<vmem>>) attributes {dimension_semantics = [#tpu.dimension_semantics<parallel>, #tpu.dimension_semantics<arbitrary>], iteration_bounds = array<i64: 2, 4>, scalar_prefetch = 0 : i64, scratch_operands = 1 : i64, tpu.core_type = #tpu.core_type<tc>, window_params = [{transform_indices = @transform_0, window_bounds = array<i64: 8, 1>}, {transform_indices = @transform_1, window_bounds = array<i64: 8, 128>}, {transform_indices = @transform_2, window_bounds = array<i64: 8, 1>}]} {
    %c0_i32 = arith.constant 0 : i32
    %0 = arith.cmpi eq, %arg1, %c0_i32 : i32
    %1 = arith.extui %0 : i1 to i32
    %c0_i32_0 = arith.constant 0 : i32
    %2 = arith.cmpi ne, %1, %c0_i32_0 : i32
    scf.if %2 {
      %cst = arith.constant 0.000000e+00 : f32
      %11 = vector.broadcast %cst : f32 to vector<8x128xf32>
      %c0_7 = arith.constant 0 : index
      %c0_8 = arith.constant 0 : index
      %12 = vector.load %arg5[%c0_7, %c0_8] : memref<8x128xf32, #tpu.memory_space<vmem>>, vector<8x128xf32>
      tpu.vector_store %arg5[%c0_7, %c0_8], %11 {strides = array<i32>} : memref<8x128xf32, #tpu.memory_space<vmem>>, vector<8x128xf32>,
    } else {
    }
    %c0 = arith.constant 0 : index
    %c0_1 = arith.constant 0 : index
    %3 = vector.load %arg3[%c0, %c0_1] : memref<8x128xf32, #tpu.memory_space<vmem>>, vector<8x128xf32>
    %4 = math.exp %3 : vector<8x128xf32>
    %c0_2 = arith.constant 0 : index
    %c0_3 = arith.constant 0 : index
    %5 = vector.load %arg5[%c0_2, %c0_3] : memref<8x128xf32, #tpu.memory_space<vmem>>, vector<8x128xf32>
    %6 = arith.addf %5, %4 : vector<8x128xf32>
    %c0_4 = arith.constant 0 : index
    %c0_5 = arith.constant 0 : index
    %7 = vector.load %arg5[%c0_4, %c0_5] : memref<8x128xf32, #tpu.memory_space<vmem>>, vector<8x128xf32>
    tpu.vector_store %arg5[%c0_4, %c0_5], %6 {strides = array<i32>} : memref<8x128xf32, #tpu.memory_space<vmem>>, vector<8x128xf32>,
    %c3_i32 = arith.constant 3 : i32
    %8 = arith.cmpi eq, %arg1, %c3_i32 : i32
    %9 = arith.extui %8 : i1 to i32
    %c0_i32_6 = arith.constant 0 : i32
    %10 = arith.cmpi ne, %9, %c0_i32_6 : i32
    scf.if %10 {
      %c0_7 = arith.constant 0 : index
      %c0_8 = arith.constant 0 : index
      %11 = vector.load %arg5[%c0_7, %c0_8] : memref<8x128xf32, #tpu.memory_space<vmem>>, vector<8x128xf32>
      %cst = arith.constant dense<0.000000e+00> : vector<8xf32>
      %12 = vector.multi_reduction <add>, %11, %cst [1] : vector<8x128xf32> to vector<8xf32>
      %13 = vector.shape_cast %12 : vector<8xf32> to vector<8x1xf32>
      %c0_9 = arith.constant 0 : index
      %c0_10 = arith.constant 0 : index
      %14 = vector.load %arg2[%c0_9, %c0_10] : memref<8x1xf32, #tpu.memory_space<vmem>>, vector<8x1xf32>
      %15 = math.exp %14 : vector<8x1xf32>
      %16 = arith.addf %15, %13 : vector<8x1xf32>
      %17 = math.sqrt %16 : vector<8x1xf32>
      %cst_11 = arith.constant 0.158113882 : f32
      %18 = vector.broadcast %cst_11 : f32 to vector<8x1xf32>
      %19 = arith.mulf %18, %17 : vector<8x1xf32>
      %20 = math.sqrt %15 : vector<8x1xf32>
      %21 = arith.subf %19, %20 : vector<8x1xf32>
      %cst_12 = arith.constant 2.000000e+00 : f32
      %22 = vector.broadcast %cst_12 : f32 to vector<8x1xf32>
      %23 = arith.mulf %21, %22 : vector<8x1xf32>
      %c0_13 = arith.constant 0 : index
      %c0_14 = arith.constant 0 : index
      %24 = vector.load %arg4[%c0_13, %c0_14] : memref<8x1xf32, #tpu.memory_space<vmem>>, vector<8x1xf32>
      tpu.vector_store %arg4[%c0_13, %c0_14], %23 {strides = array<i32>} : memref<8x1xf32, #tpu.memory_space<vmem>>, vector<8x1xf32>,
    } else {
    }
    return
  }
  func.func @transform_0(%arg0: i32, %arg1: i32) -> (i32, i32) {
    %c0_i32 = arith.constant 0 : i32
    %c0_i32_0 = arith.constant 0 : i32
    return %arg0, %c0_i32 : i32, i32
  }
  func.func @transform_1(%arg0: i32, %arg1: i32) -> (i32, i32) {
    %c0_i32 = arith.constant 0 : i32
    return %arg0, %arg1 : i32, i32
  }
  func.func @transform_2(%arg0: i32, %arg1: i32) -> (i32, i32) {
    %c0_i32 = arith.constant 0 : i32
    %c0_i32_0 = arith.constant 0 : i32
    return %arg0, %c0_i32 : i32, i32
  }
}

</mosaic_0001>

<bundles_post_ra>
// kernel: tpu_custom_call.1
= control target key start
LH: loop header
LB: loop body
LE: loop exit
PB: predicated region body
PF: predicated region fallthrough
CT: control target
= control target key end

     0   :  { %7 = vsyncpa [#allocation4], 0  ;;  %s664_s0 = inlined_call_operand.vmem [shape: f32[16,1], index: 0, kind: input, shape index: {}]   ;;  %s665_s1 = inlined_call_operand.hbm [shape: f32[16,512], index: 1, kind: input, shape index: {}]   ;;  %s666_s2 = inlined_call_operand.vmem [shape: f32[16,1], index: 2, kind: output, shape index: {}]  }
   0x1   :  { %9 = vsyncpa [#allocation4 + $0x1], 0  ;;  %s531_s9 = smov 0   ;;  %s533_s10 = smov 0  }
   0x2   :  { %s535_s11 = smov 0   ;;  %s537_s12 = smov 0  }
   0x3   :  { %s539_s13 = smov 0   ;;  %s541_s14 = smov 0  }
   0x4   :  { %s543_s15 = smov 0   ;;  %s545_s16 = smov 0  }
   0x5 LB: > { %s323_s17 = sadd.s32 4294967295, %s512_s16   ;;  %s24_s18 = sadd.s32 1, %s504_s14  ;;  %s512_s16 = sphi %s545_s16, %s15_s16   ;;  %s508_s15 = sphi %s543_s15, %s676_s15   ;;  %s504_s14 = sphi %s541_s14, %s675_s14   ;;  %s500_s13 = sphi %s539_s13, %s674_s13   ;;  %s496_s12 = sphi %s537_s12, %s673_s12   ;;  %s492_s11 = sphi %s535_s11, %s672_s11   ;;  %s488_s10 = sphi %s533_s10, %s671_s10   ;;  %s484_s9 = sphi %s531_s9, %s670_s9  }
   0x6   : > { %p25_p0 = scmp.ge.s32.totalorder %s24_s18, 4  ;;  %s27_s19 = sadd.s32 1, %s508_s15 }
   0x7   : > { %s62_s20 = sadd.s32 1, %s492_s11  ;;  %p69_p1 = scmp.ne.s32.totalorder %s492_s11, %s488_s10 }
   0x8   : > { %s678_s18 = smov (%p25_p0, %s24_s18), 0  ;;  %s680_s19 = smov (!%p25_p0, %s27_s19), %s508_s15 }
   0x9   : > { %s58_s21 = ssub.s32 %s504_s14, %s678_s18  ;;  %p70_p2 = scmp.eq.s32.totalorder %s512_s16, 0 }
   0xa   : > { %p29_p3 = scmp.ge.s32.totalorder %s680_s19, 2  ;;  %p75_p4 = scmp.ne.s32.totalorder %s488_s10, %s484_s9 }
   0xb   : > { %p582_p5 = por %p70_p2, %p69_p1  ;;  %p76_p6 = scmp.eq.s32.totalorder %s323_s17, 0 }
   0xc   : > { %s682_s19 = smov (%p29_p3, %s680_s19), 0  ;;  %p344_p8 = scmp.lt.s32.totalorder %s512_s16, 8 }
   0xd   : > { %p588_p7 = por %p76_p6, %p75_p4  ;;  %s57_s24 = ssub.s32 %s508_s15, %s682_s19 }
   0xe   : > { %s59_s25 = sor.u32 %s58_s21, %s57_s24  ;;  %s132_s26 = sand.u32 1, %s492_s11  }
   0xf   : > { %p60_p9 = scmp.eq.s32.totalorder %s59_s25, 0  ;;  %s327_s27 = sshll.u32 %s132_s26, 3 }
  0x10   : > { %s328_s28 = sshll.u32 %s508_s15, 2  ;;  %s136_s4 = scalar_lea.vmem [#allocation3], %s327_s27 }
  0x11   : > { %s598_s29 = scalar_select %p60_p9, %s492_s11, %s62_s20  }
  0x12   : > { %s141_s30 = sadd.s32 %s504_s14, %s328_s28  ;;  %s145_s5 = sshll.u32 %s136_s4, 4  ;;  %s146_s5 = int_to_ptr.vmem [resolvable:$true] %s145_s5 }
  0x13   : > { %s329_s3 = sshll.u32 %s141_s30, 7  ;;  %p608_p10 = pnand %p344_p8, %p582_p5 }
  0x14   : > { %s143_s8 = scalar_lea.hbm %s665_s1, %s329_s3  ;;  %p330_p11 = scmp.ge.s32.totalorder %s512_s16, 1 }
  0x15   : > { %p150_p12 = scmp.lt.s32.totalorder %s512_s16, 9  ;;  %s133_s17 = scalar_lea.sflag [#allocation4], %s132_s26 }
  0x16   : > { %p420_p13 = pneg %p608_p10  ;;  %s431_s20 = scalar_lea.vmem %s146_s5, 128 }
  0x17   : > { %p432_p0 = scmp.ne.s32.totalorder %s146_s5, %s431_s20  ;;  %s514_s21 = smov [#allocation3]  }
  0x18   : > { %s436_s24 = sshll.u32 %s514_s21, 4  ;;  %s437_s24 = int_to_ptr.vmem [resolvable:$false] %s436_s24 }
  0x19   : > { %p434_p1 = pnand %p432_p0, %p420_p13  ;;  %s438_s25 = scalar_lea.vmem %s437_s24, 256 }
  0x1a   : > { %p439_p3 = scmp.lt.s32.totalorder %s146_s5, %s437_s24  ;;  %p440_p4 = scmp.lt.s32.totalorder %s438_s25, %s431_s20 }
  0x1b   : > { %p435_p2 = pneg %p434_p1 }
  0x1c   : > { %p441_p5 = por %p440_p4, %p439_p3 }
  0x1e   : > { %p442_p6 = pnand %p441_p5, %p435_p2 }
  0x20   : > { %445 = shalt.err (!%p442_p6)
}
  0x21   : > { %343 = dma.hbm_to_vmem [thread:$0]  (!%p608_p10), %s143_s8, 128, %s146_s5, %s133_s17  }
  0x22   : > { %p151_p8 = pnand %p330_p11, %p150_p12 }
  0x23   : > { %s156_s22 = sand.u32 (!%p151_p8), 1, %s488_s10  }
  0x24   : > { %154 = sbr.rel (%p151_p8) target bundleno = 243 (0xf3), region = 28  ;;  %s331_s26 = sshll.u32 (!%p151_p8), %s156_s22, 3 }
  0x25   : > { %s157_s27 = scalar_lea.sflag (!%p151_p8), [#allocation4], %s156_s22  ;;  %s160_s28 = scalar_lea.vmem (!%p151_p8), [#allocation3], %s331_s26 }
  0x29   : > { %479 = dma.done.wait (%p588_p7), %s157_s27, 128  }
  0x2a   : > { %481 = vsyncadd (%p588_p7), %s157_s27, 4294967168  ;;  %p184_p9 = scmp.lt.s32.totalorder %s500_s13, 1  ;;  %p334_p10 = scmp.ne.s32.totalorder %s496_s12, 0 }
  0x2c   : > { %s684_s13 = smov (!%p184_p9, %s500_s13), 1  ;;  %195 = sbr.rel (%p334_p10) target bundleno = 51 (0x33), region = 36 }
  0x2d   : > { %s332_s30 = sshll.u32 %s684_s13, 3 }
  0x2e   : > { %s187_s5 = scalar_lea.vmem %s664_s0, %s332_s30  ;;  %s635_s8 = scalar_lea.vmem %s666_s2, %s332_s30 }
  0x31   : > { %v515_v0 = vmov 0.0  }
  0x32   : > { %196 = vst [vmem:[#allocation2] sm:$0xff] %v515_v0 }
  0x33 PF: > { %v197_v1 = vld [vmem:[%s160_s28] sm:$0xff]  ;;  %p335_p7 = scmp.ne.s32.totalorder %s496_s12, 3 }
  0x34   : > { %v198_v2 = vmul.f32 1.442695, %v197_v1 }
  0x36   : > { %410 = vpow2.f32 %v198_v2 }
  0x39   : > { %v200_v3 = vld [vmem:[#allocation2] sm:$0xff] }
  0x42   : > { %206 = sbr.rel (%p335_p7) target bundleno = 243 (0xf3), region = 40 }
  0x43   : > { %v411_v4 = vpop.eup %410 }
  0x44   : > { %v201_v5 = vadd.f32 %v411_v4, %v200_v3 }
  0x46   : > { %202 = vst [vmem:[#allocation2] sm:$0xff] %v201_v5 }
  0x47   : > { %v210_v7 = vld [vmem:[%s187_s5] sm:$0xff]  ;;  %vm231_vm4 = vcmask 7168  }
  0x48   : > { %v211_v8 = vmul.f32 1.442695, %v210_v7 }
  0x4a   : > { %412 = vpow2.f32 %v211_v8 }
  0x4d   : > { %v207_v6 = vld [vmem:[#allocation2] sm:$0xff] }
  0x4e   : > { %208 = vadd.xlane.f32.xlu0 %v207_v6 }
  0x57   : > { %v413_v9 = vpop.eup %412 }
  0x58   : > { %414 = vrsqrt.f32 %v413_v9  ;;  %vm224_vm0 = vcmp.eq.f32.partialorder %v413_v9, inf  ;;  %v227_v15 = vand.u32 2147483648, %v413_v9  ;;  %vm226_vm1 = vcmp.eq.f32.partialorder %v413_v9, 0.0 }
  0x65   : > { %v415_v12 = vpop.eup %414 }
  0x66   : > { %v223_v13 = vmul.f32 %v415_v12, %v413_v9 }
  0x68   : > { %v225_v17 = vsel %vm224_vm0, %v413_v9, %v223_v13 }
  0x69   : > { %v228_v21 = vsel %vm226_vm1, %v227_v15, %v225_v17 }
  0xd7   : > { %v209_v10 = vpop.xlane.xlu0 %208 }
  0xd8   : > { %v213_v11 = vadd.f32 %v413_v9, %v209_v10 }
  0xda   : > { %416 = vrsqrt.f32 %v213_v11  ;;  %vm216_vm2 = vcmp.eq.f32.partialorder %v213_v11, inf  ;;  %v219_v18 = vand.u32 2147483648, %v213_v11  ;;  %vm218_vm3 = vcmp.eq.f32.partialorder %v213_v11, 0.0 }
  0xe7   : > { %v417_v14 = vpop.eup %416 }
  0xe8   : > { %v215_v16 = vmul.f32 %v417_v14, %v213_v11 }
  0xea   : > { %v217_v19 = vsel %vm216_vm2, %v213_v11, %v215_v16 }
  0xeb   : > { %v220_v20 = vsel %vm218_vm3, %v219_v18, %v217_v19 }
  0xec   : > { %v221_v22 = vmul.f32 0.15811388, %v220_v20 }
  0xee   : > { %v229_v23 = vsub.f32 %v221_v22, %v228_v21 }
  0xf0   : > { %v230_v24 = vmul.f32 2.0, %v229_v23 }
  0xf2   : > { %232 = vst.msk [vmem:[%s635_s8] sm:$0xff] %vm231_vm4, %v230_v24 }
  0xf3 PF: > { %s15_s16 = sadd.s32 1, %s512_s16   ;;  %s670_s9 = smov %s488_s10 }
  0xf4   : > { %p12_p11 = scmp.ge.s32.totalorder %s15_s16, 10   ;;  %s671_s10 = smov %s492_s11 }
  0xf5   : > { %s672_s11 = smov %s598_s29  ;;  %s673_s12 = smov %s504_s14 }
  0xf6   : > { %s674_s13 = smov %s508_s15  ;;  %s675_s14 = smov %s678_s18 }
  0xf7   : > { %s676_s15 = smov %s682_s19  ;;  %14 = sbr.rel (!%p12_p11) target bundleno = 5 (0x5), region = 79 }
  0xfc   :  { %252 = vsyncpa [#allocation4], 1 }
  0xfd   :  { %254 = vsyncpa [#allocation4 + $0x1], 1 }

</bundles_post_ra>
